<compile_context>
chip_gen: v7x
topology: tpu7x:2x2x1
jax: 0.10.0
libtpu: 0.0.40
codegen_flags: <defaults>
</compile_context>

<pallas_src>
import jax
import jax.numpy as jnp
from jax.experimental import pallas as pl
from jax.experimental.pallas import tpu as pltpu

HIDDEN = 128          # hidden width (matches MXU tile on v5e)
IN_DIM = 9            # real board size
OUT_DIM = 9           # real number of moves
PAD_IN = 16           # compact lane-padded input width
PAD_OUT = 16          # compact lane-padded output width
SUBLANE = 8
NEG_BIG = -1e30       # "-inf"-like bias for padded output lanes


def _round_up(n, m):
    return ((n + m - 1) // m) * m


def _choose_batch_tile(batch, max_tile):
    """Pick (TB, pB): bounded padding, >=2 grid steps when batch is big enough."""
    batch = max(batch, 1)
    n_tiles = pl.cdiv(batch, max_tile)
    if n_tiles < 2 and batch >= 2 * SUBLANE:
        n_tiles = 2                      # let v7x shard across both TensorCores
    tb = _round_up(pl.cdiv(batch, n_tiles), SUBLANE)
    pb = _round_up(batch, tb)
    return tb, pb


def tictactoe_kernel(x_ref, w1_ref, b1_ref, w2_ref, b2_ref, w3_ref, b3_ref,
                     out_ref):
    x = x_ref[...]                                            # [TB, 16] bf16

    # fc1 + ReLU (bf16 operands -> f32 accumulate on MXU)
    h1 = jnp.dot(x, w1_ref[...], preferred_element_type=jnp.float32)
    h1 = jnp.maximum(h1 + b1_ref[...], 0.0)                   # [TB, 128] f32

    # fc2 + ReLU
    h2 = jnp.dot(h1.astype(jnp.bfloat16), w2_ref[...],
                 preferred_element_type=jnp.float32)
    h2 = jnp.maximum(h2 + b2_ref[...], 0.0)                   # [TB, 128] f32

    # output layer, compact 16 lanes; padded bias lanes carry -1e30
    logits = jnp.dot(h2.astype(jnp.bfloat16), w3_ref[...],
                     preferred_element_type=jnp.float32)
    logits = logits + b3_ref[...]                             # [TB, 16] f32

    # numerically stable softmax over the 16 lanes; padded lanes exp to 0
    m = jnp.max(logits, axis=1, keepdims=True)
    e = jnp.exp(logits - m)
    denom = jnp.sum(e, axis=1, keepdims=True)
    inv = pl.reciprocal(denom, approx=True)                   # EUP slot
    inv = inv * (2.0 - denom * inv)                           # 1 Newton step
    out_ref[...] = e * inv                                    # [TB, 16] f32


def prepare_params(raw_params):
    """Pad/cast raw f32 nn.Linear-style params into the compact kernel layout.

    Raw layout: W stored as [in_features, out_features] (transposed vs torch),
    b as [1, out_features].
    """
    w1, b1, w2, b2, w3, b3 = raw_params
    w1p = jnp.zeros((PAD_IN, HIDDEN), jnp.float32).at[:IN_DIM, :].set(w1)
    w3p = jnp.zeros((HIDDEN, PAD_OUT), jnp.float32).at[:, :OUT_DIM].set(w3)
    b3p = jnp.full((1, PAD_OUT), NEG_BIG, jnp.float32).at[:, :OUT_DIM].set(b3)
    return (w1p.astype(jnp.bfloat16), b1,
            w2.astype(jnp.bfloat16), b2,
            w3p.astype(jnp.bfloat16), b3p)


def tictactoe_forward(x, padded_params, *, max_tile=1024):
    """x: [B, 9] (any float dtype). Returns softmax probs [B, 9] (f32)."""
    w1, b1, w2, b2, w3, b3 = padded_params
    B = x.shape[0]

    TB, pB = _choose_batch_tile(B, max_tile)

    # Compact input: [pB, 16] bf16; extra rows / lanes are zeros.
    xp = jnp.zeros((pB, PAD_IN), jnp.bfloat16).at[:B, :IN_DIM].set(
        x.astype(jnp.bfloat16))

    grid = (pB // TB,)

    def _const(i):
        return (0, 0)

    weight_bytes = ((PAD_IN * HIDDEN + HIDDEN * HIDDEN + HIDDEN * PAD_OUT) * 2
                    + (HIDDEN + HIDDEN + PAD_OUT) * 4)
    cost = pl.CostEstimate(
        flops=2 * pB * HIDDEN * (PAD_IN + HIDDEN + PAD_OUT),
        transcendentals=pB * PAD_OUT,
        bytes_accessed=pB * PAD_IN * 2 + pB * PAD_OUT * 4 + weight_bytes,
    )

    out = pl.pallas_call(
        tictactoe_kernel,
        out_shape=jax.ShapeDtypeStruct((pB, PAD_OUT), jnp.float32),
        grid=grid,
        in_specs=[
            pl.BlockSpec((TB, PAD_IN), lambda i: (i, 0)),     # x tile
            pl.BlockSpec((PAD_IN, HIDDEN), _const),           # W1
            pl.BlockSpec((1, HIDDEN), _const),                 # b1
            pl.BlockSpec((HIDDEN, HIDDEN), _const),            # W2
            pl.BlockSpec((1, HIDDEN), _const),                 # b2
            pl.BlockSpec((HIDDEN, PAD_OUT), _const),           # W3
            pl.BlockSpec((1, PAD_OUT), _const),                # b3
        ],
        out_specs=pl.BlockSpec((TB, PAD_OUT), lambda i: (i, 0)),
        compiler_params=pltpu.CompilerParams(
            dimension_semantics=("parallel",)),
        cost_estimate=cost,
    )(xp, w1, b1, w2, b2, w3, b3)

    return out[:B, :OUT_DIM]


def init_params(key):
    """Raw f32 params matching PyTorch nn.Linear init ranges/shapes.

    nn.Linear(in, out) has weight [out, in]; stored here transposed [in, out].
    """
    ks = jax.random.split(key, 6)

    def linear(kw, kb, fan_in, fan_out):
        bound = 1.0 / jnp.sqrt(fan_in)
        w = jax.random.uniform(kw, (fan_in, fan_out), jnp.float32,
                               minval=-bound, maxval=bound)
        b = jax.random.uniform(kb, (1, fan_out), jnp.float32,
                               minval=-bound, maxval=bound)
        return w, b

    w1, b1 = linear(ks[0], ks[1], IN_DIM, HIDDEN)
    w2, b2 = linear(ks[2], ks[3], HIDDEN, HIDDEN)
    w3, b3 = linear(ks[4], ks[5], HIDDEN, OUT_DIM)
    return (w1, b1, w2, b2, w3, b3)


def reference_forward_mirrored(x, padded_params):
    """Plain-JAX reference that mirrors the kernel's bf16/pad math exactly."""
    w1, b1, w2, b2, w3, b3 = padded_params
    B = x.shape[0]
    xp = jnp.zeros((B, PAD_IN), jnp.bfloat16).at[:, :IN_DIM].set(
        x.astype(jnp.bfloat16))
    h1 = jnp.maximum(
        jnp.dot(xp, w1, preferred_element_type=jnp.float32) + b1, 0.0)
    h2 = jnp.maximum(
        jnp.dot(h1.astype(jnp.bfloat16), w2,
                preferred_element_type=jnp.float32) + b2, 0.0)
    logits = jnp.dot(h2.astype(jnp.bfloat16), w3,
                     preferred_element_type=jnp.float32) + b3
    return jax.nn.softmax(logits, axis=1)[:, :OUT_DIM]


def reference_forward_f32(x, raw_params):
    """Pure f32, unpadded reference (original PyTorch semantics)."""
    w1, b1, w2, b2, w3, b3 = raw_params
    h1 = jnp.maximum(x @ w1 + b1, 0.0)
    h2 = jnp.maximum(h1 @ w2 + b2, 0.0)
    logits = h2 @ w3 + b3
    return jax.nn.softmax(logits, axis=1)


if __name__ == "__main__":
    key = jax.random.PRNGKey(0)
    pkey, xkey = jax.random.split(key)

    raw_params = init_params(pkey)
    padded_params = prepare_params(raw_params)

    # B=8: single-tile path; B=24: multi-step grid + padded batch rows.
    for B in (8, 24):
        xb = jax.random.randint(jax.random.fold_in(xkey, B), (B, IN_DIM),
                                minval=-1, maxval=2).astype(jnp.float32)

        out = jax.block_until_ready(tictactoe_forward(xb, padded_params))
        assert out.shape == (B, OUT_DIM)

        # Tight check vs a reference mirroring the kernel's bf16/pad math.
        ref = reference_forward_mirrored(xb, padded_params)
        assert jnp.allclose(out, ref, atol=1e-4, rtol=1e-4), \
            "mismatch vs mirrored reference"

        # Loose check vs original f32 semantics (bf16 weight quantization only).
        ref_f32 = reference_forward_f32(xb, raw_params)
        assert jnp.allclose(out, ref_f32, atol=2e-2), "mismatch vs f32 reference"

        # Softmax rows must sum to 1 (padded lanes contribute 0).
        assert jnp.allclose(jnp.sum(out, axis=1), 1.0, atol=1e-4), \
            "softmax rows must sum to 1"

    print("KERNEL_OK")
</pallas_src>

<mosaic_0001>
module attributes {stable_mosaic.version = 11 : i64} {
  func.func @tictactoe_kernel(%arg0: i32, %arg1: memref<8x16xbf16, #tpu.memory_space<vmem>>, %arg2: memref<16x128xbf16, #tpu.memory_space<vmem>>, %arg3: memref<1x128xf32, #tpu.memory_space<vmem>>, %arg4: memref<128x128xbf16, #tpu.memory_space<vmem>>, %arg5: memref<1x128xf32, #tpu.memory_space<vmem>>, %arg6: memref<128x16xbf16, #tpu.memory_space<vmem>>, %arg7: memref<1x16xf32, #tpu.memory_space<vmem>>, %arg8: memref<8x16xf32, #tpu.memory_space<vmem>>) attributes {dimension_semantics = [#tpu.dimension_semantics<parallel>], iteration_bounds = array<i64: 1>, scalar_prefetch = 0 : i64, scratch_operands = 0 : i64, tpu.core_type = #tpu.core_type<tc>, window_params = [{transform_indices = @transform_0, window_bounds = array<i64: 8, 16>}, {pipeline_mode = #tpu.pipeline_mode<synchronous>, transform_indices = @transform_1, window_bounds = array<i64: 16, 128>}, {pipeline_mode = #tpu.pipeline_mode<synchronous>, transform_indices = @transform_2, window_bounds = array<i64: 1, 128>}, {pipeline_mode = #tpu.pipeline_mode<synchronous>, transform_indices = @transform_3, window_bounds = array<i64: 128, 128>}, {pipeline_mode = #tpu.pipeline_mode<synchronous>, transform_indices = @transform_4, window_bounds = array<i64: 1, 128>}, {pipeline_mode = #tpu.pipeline_mode<synchronous>, transform_indices = @transform_5, window_bounds = array<i64: 128, 16>}, {pipeline_mode = #tpu.pipeline_mode<synchronous>, transform_indices = @transform_6, window_bounds = array<i64: 1, 16>}, {transform_indices = @transform_7, window_bounds = array<i64: 8, 16>}]} {
    %c0 = arith.constant 0 : index
    %c0_0 = arith.constant 0 : index
    %0 = vector.load %arg1[%c0, %c0_0] : memref<8x16xbf16, #tpu.memory_space<vmem>>, vector<8x16xbf16>
    %c0_1 = arith.constant 0 : index
    %c0_2 = arith.constant 0 : index
    %1 = vector.load %arg2[%c0_1, %c0_2] : memref<16x128xbf16, #tpu.memory_space<vmem>>, vector<16x128xbf16>
    %cst = arith.constant dense<0.000000e+00> : vector<8x128xf32>
    %2 = tpu.matmul %0, %1, %cst {dimension_numbers = #tpu.dot_dimension_numbers<[1], [0], [0], [1], [0, 0, 1, 1], [], []>} : vector<8x16xbf16>, vector<16x128xbf16>, vector<8x128xf32> -> vector<8x128xf32>
    %c0_3 = arith.constant 0 : index
    %c0_4 = arith.constant 0 : index
    %3 = vector.load %arg3[%c0_3, %c0_4] : memref<1x128xf32, #tpu.memory_space<vmem>>, vector<1x128xf32>
    %4 = vector.broadcast %3 : vector<1x128xf32> to vector<8x128xf32>
    %5 = arith.addf %2, %4 : vector<8x128xf32>
    %cst_5 = arith.constant 0.000000e+00 : f32
    %6 = vector.broadcast %cst_5 : f32 to vector<8x128xf32>
    %7 = arith.maximumf %5, %6 : vector<8x128xf32>
    %8 = arith.truncf %7 : vector<8x128xf32> to vector<8x128xbf16>
    %c0_6 = arith.constant 0 : index
    %c0_7 = arith.constant 0 : index
    %9 = vector.load %arg4[%c0_6, %c0_7] : memref<128x128xbf16, #tpu.memory_space<vmem>>, vector<128x128xbf16>
    %cst_8 = arith.constant dense<0.000000e+00> : vector<8x128xf32>
    %10 = tpu.matmul %8, %9, %cst_8 {dimension_numbers = #tpu.dot_dimension_numbers<[1], [0], [0], [1], [0, 0, 1, 1], [], []>} : vector<8x128xbf16>, vector<128x128xbf16>, vector<8x128xf32> -> vector<8x128xf32>
    %c0_9 = arith.constant 0 : index
    %c0_10 = arith.constant 0 : index
    %11 = vector.load %arg5[%c0_9, %c0_10] : memref<1x128xf32, #tpu.memory_space<vmem>>, vector<1x128xf32>
    %12 = vector.broadcast %11 : vector<1x128xf32> to vector<8x128xf32>
    %13 = arith.addf %10, %12 : vector<8x128xf32>
    %cst_11 = arith.constant 0.000000e+00 : f32
    %14 = vector.broadcast %cst_11 : f32 to vector<8x128xf32>
    %15 = arith.maximumf %13, %14 : vector<8x128xf32>
    %16 = arith.truncf %15 : vector<8x128xf32> to vector<8x128xbf16>
    %c0_12 = arith.constant 0 : index
    %c0_13 = arith.constant 0 : index
    %17 = vector.load %arg6[%c0_12, %c0_13] : memref<128x16xbf16, #tpu.memory_space<vmem>>, vector<128x16xbf16>
    %cst_14 = arith.constant dense<0.000000e+00> : vector<8x16xf32>
    %18 = tpu.matmul %16, %17, %cst_14 {dimension_numbers = #tpu.dot_dimension_numbers<[1], [0], [0], [1], [0, 0, 1, 1], [], []>} : vector<8x128xbf16>, vector<128x16xbf16>, vector<8x16xf32> -> vector<8x16xf32>
    %c0_15 = arith.constant 0 : index
    %c0_16 = arith.constant 0 : index
    %19 = vector.load %arg7[%c0_15, %c0_16] : memref<1x16xf32, #tpu.memory_space<vmem>>, vector<1x16xf32>
    %20 = vector.broadcast %19 : vector<1x16xf32> to vector<8x16xf32>
    %21 = arith.addf %18, %20 : vector<8x16xf32>
    %cst_17 = arith.constant dense<0xFF800000> : vector<8xf32>
    %22 = vector.multi_reduction <maximumf>, %21, %cst_17 [1] : vector<8x16xf32> to vector<8xf32>
    %23 = vector.shape_cast %22 : vector<8xf32> to vector<8x1xf32>
    %24 = vector.broadcast %23 : vector<8x1xf32> to vector<8x16xf32>
    %25 = arith.subf %21, %24 : vector<8x16xf32>
    %26 = math.exp %25 : vector<8x16xf32>
    %cst_18 = arith.constant dense<0.000000e+00> : vector<8xf32>
    %27 = vector.multi_reduction <add>, %26, %cst_18 [1] : vector<8x16xf32> to vector<8xf32>
    %28 = vector.shape_cast %27 : vector<8xf32> to vector<8x1xf32>
    %29 = tpu.reciprocal %28 {approx = true} : vector<8x1xf32> -> vector<8x1xf32>
    %30 = arith.mulf %28, %29 : vector<8x1xf32>
    %cst_19 = arith.constant 2.000000e+00 : f32
    %31 = vector.broadcast %cst_19 : f32 to vector<8x1xf32>
    %32 = arith.subf %31, %30 : vector<8x1xf32>
    %33 = arith.mulf %29, %32 : vector<8x1xf32>
    %34 = vector.broadcast %33 : vector<8x1xf32> to vector<8x16xf32>
    %35 = arith.mulf %26, %34 : vector<8x16xf32>
    %c0_20 = arith.constant 0 : index
    %c0_21 = arith.constant 0 : index
    %36 = vector.load %arg8[%c0_20, %c0_21] : memref<8x16xf32, #tpu.memory_space<vmem>>, vector<8x16xf32>
    tpu.vector_store %arg8[%c0_20, %c0_21], %35 {strides = array<i32>} : memref<8x16xf32, #tpu.memory_space<vmem>>, vector<8x16xf32>,
    return
  }
  func.func @transform_0(%arg0: i32) -> (i32, i32) {
    %c0_i32 = arith.constant 0 : i32
    %c0_i32_0 = arith.constant 0 : i32
    return %arg0, %c0_i32 : i32, i32
  }
  func.func @transform_1(%arg0: i32) -> (i32, i32) {
    %c0_i32 = arith.constant 0 : i32
    %c0_i32_0 = arith.constant 0 : i32
    %c0_i32_1 = arith.constant 0 : i32
    return %c0_i32, %c0_i32_0 : i32, i32
  }
  func.func @transform_2(%arg0: i32) -> (i32, i32) {
    %c0_i32 = arith.constant 0 : i32
    %c0_i32_0 = arith.constant 0 : i32
    %c0_i32_1 = arith.constant 0 : i32
    return %c0_i32, %c0_i32_0 : i32, i32
  }
  func.func @transform_3(%arg0: i32) -> (i32, i32) {
    %c0_i32 = arith.constant 0 : i32
    %c0_i32_0 = arith.constant 0 : i32
    %c0_i32_1 = arith.constant 0 : i32
    return %c0_i32, %c0_i32_0 : i32, i32
  }
  func.func @transform_4(%arg0: i32) -> (i32, i32) {
    %c0_i32 = arith.constant 0 : i32
    %c0_i32_0 = arith.constant 0 : i32
    %c0_i32_1 = arith.constant 0 : i32
    return %c0_i32, %c0_i32_0 : i32, i32
  }
  func.func @transform_5(%arg0: i32) -> (i32, i32) {
    %c0_i32 = arith.constant 0 : i32
    %c0_i32_0 = arith.constant 0 : i32
    %c0_i32_1 = arith.constant 0 : i32
    return %c0_i32, %c0_i32_0 : i32, i32
  }
  func.func @transform_6(%arg0: i32) -> (i32, i32) {
    %c0_i32 = arith.constant 0 : i32
    %c0_i32_0 = arith.constant 0 : i32
    %c0_i32_1 = arith.constant 0 : i32
    return %c0_i32, %c0_i32_0 : i32, i32
  }
  func.func @transform_7(%arg0: i32) -> (i32, i32) {
    %c0_i32 = arith.constant 0 : i32
    %c0_i32_0 = arith.constant 0 : i32
    return %arg0, %c0_i32 : i32, i32
  }
}

</mosaic_0001>

<bundles_post_ra>
// kernel: tpu_custom_call.1
= control target key start
LH: loop header
LB: loop body
LE: loop exit
PB: predicated region body
PF: predicated region fallthrough
CT: control target
= control target key end

     0   :  { %v478_v1 = vmov 0.0   ;;  %vm479_vm0 = vmmov 0   ;;  %vm44_vm1 = vcmask 130048   ;;  %s620_s0 = inlined_call_operand.vmem [shape: bf16[8,16], index: 0, kind: input, shape index: {}]   ;;  %s621_s1 = inlined_call_operand.vmem [shape: bf16[16,128], index: 1, kind: input, shape index: {}]   ;;  %s622_s2 = inlined_call_operand.vmem [shape: f32[1,128], index: 2, kind: input, shape index: {}]   ;;  %s623_s3 = inlined_call_operand.vmem [shape: bf16[128,128], index: 3, kind: input, shape index: {}]   ;;  %s624_s4 = inlined_call_operand.vmem [shape: f32[1,128], index: 4, kind: input, shape index: {}]   ;;  %s625_s5 = inlined_call_operand.vmem [shape: bf16[128,16], index: 5, kind: input, shape index: {}]   ;;  %s626_s6 = inlined_call_operand.vmem [shape: f32[1,16], index: 6, kind: input, shape index: {}]   ;;  %s627_s7 = inlined_call_operand.hbm [shape: f32[8,16], index: 7, kind: output, shape index: {}]  }
   0x1   :  { %v433_v0 = vld [vmem:[%s621_s1] sm:$0xff]   ;;  %384 = vmatprep.subr.bf16.mxu0 %v478_v1  ;;  %390 = vmatprep.subr.bf16.mxu1 %v478_v1  ;;  %v435_v4 = vld [vmem:[%s623_s3 + $0x8] sm:$0xff]   ;;  %v436_v5 = vld [vmem:[%s623_s3 + $0x10] sm:$0xff]  }
   0x2   :  { %v28_v2 = vld [vmem:[%s620_s0] sm:$0xf]  ;;  %385 = vmatpush3.bf16.msra.mxu0 %v433_v0  ;;  %386 = vmatprep.mubr.msk.bf16.mxu0 %vm479_vm0, %v478_v1  ;;  %v437_v6 = vld [vmem:[%s623_s3 + $0x18] sm:$0xff]  }
   0x3   :  { %v434_v3 = vld [vmem:[%s623_s3] sm:$0xff]   ;;  %406 = vmatprep.mubr.msk.bf16.mxu1 %vm479_vm0, %v478_v1  ;;  %410 = vmatprep.subr.bf16.mxu0 %v478_v1 }
   0x4   :  { %391 = vmatpush3.bf16.msra.mxu1 %v434_v3 }
   0x5   :  { %387 = vmatmul.mubr.msk.bf16.vlgmr.msra.gmra.mrb[0].mxu0 %vm44_vm1, %v28_v2  ;;  %392 = vmatprep.subr.bf16.mxu1 %v478_v1 }
   0x6   :  { %426 = vmatprep.mubr.msk.bf16.mxu0 %vm479_vm0, %v478_v1 }
   0x8   :  { %393 = vmatpush3.bf16.msra.mxu1 %v435_v4 }
   0x9   :  { %394 = vmatprep.subr.bf16.mxu1 %v478_v1 }
   0xc   :  { %395 = vmatpush3.bf16.msra.mxu1 %v436_v5 }
   0xd   :  { %396 = vmatprep.subr.bf16.mxu1 %v478_v1 }
   0xe   :  { %12 = vsyncpa [#allocation3], 0  ;;  %v438_v7 = vld [vmem:[%s623_s3 + $0x20] sm:$0xff]   ;;  %v439_v8 = vld [vmem:[%s623_s3 + $0x28] sm:$0xff]  }
   0xf   :  { %v440_v9 = vld [vmem:[%s623_s3 + $0x30] sm:$0xff]   ;;  %v441_v10 = vld [vmem:[%s623_s3 + $0x38] sm:$0xff]   ;;  %v442_v11 = vld [vmem:[%s625_s5] sm:$0xff]  }
  0x10   :  { %397 = vmatpush3.bf16.msra.mxu1 %v437_v6  ;;  %411 = vmatpush3.bf16.msra.mxu0 %v442_v11  ;;  %v443_v12 = vld [vmem:[%s625_s5 + $0x8] sm:$0xff]   ;;  %v444_v13 = vld [vmem:[%s625_s5 + $0x10] sm:$0xff]   ;;  %v445_v14 = vld [vmem:[%s625_s5 + $0x18] sm:$0xff]  }
  0x11   :  { %398 = vmatprep.subr.bf16.mxu1 %v478_v1  ;;  %412 = vmatprep.subr.bf16.mxu0 %v478_v1  ;;  %v446_v15 = vld [vmem:[%s625_s5 + $0x20] sm:$0xff]   ;;  %v447_v16 = vld [vmem:[%s625_s5 + $0x28] sm:$0xff]   ;;  %v448_v25 = vld [vmem:[%s625_s5 + $0x30] sm:$0xff]  }
  0x12   :  { %v343_v17 = vld [vmem:[%s622_s2] ss:$0 sm:$0xff]  ;;  %v449_v26 = vld [vmem:[%s625_s5 + $0x38] sm:$0xff]  }
  0x13   :  { %v346_v27 = vld [vmem:[%s624_s4] ss:$0 sm:$0xff]  ;;  %s480_s4 = smov [#allocation2]  }
  0x14   :  { %399 = vmatpush3.bf16.msra.mxu1 %v438_v7  ;;  %413 = vmatpush3.bf16.msra.mxu0 %v443_v12  ;;  %v355_v35 = vld [vmem:[%s626_s6] ss:$0 sm:$0xff]  ;;  %s335_s5 = sshll.u32 %s480_s4, 4  ;;  %s336_s5 = int_to_ptr.vmem [resolvable:$true] %s335_s5 }
  0x15   :  { %400 = vmatprep.subr.bf16.mxu1 %v478_v1  ;;  %414 = vmatprep.subr.bf16.mxu0 %v478_v1  ;;  %s454_s6 = scalar_lea.vmem %s336_s5, 128  ;;  %p459_p1 = scmp.lt.s32.totalorder %s336_s5, %s336_s5 }
  0x16   :  { %p455_p0 = scmp.ne.s32.totalorder %s336_s5, %s454_s6  ;;  %p460_p2 = scmp.lt.s32.totalorder %s454_s6, %s454_s6 }
  0x18   :  { %401 = vmatpush3.bf16.msra.mxu1 %v439_v8  ;;  %415 = vmatpush3.bf16.msra.mxu0 %v444_v13  ;;  %p461_p3 = por %p460_p2, %p459_p1 }
  0x19   :  { %402 = vmatprep.subr.bf16.mxu1 %v478_v1  ;;  %416 = vmatprep.subr.bf16.mxu0 %v478_v1 }
  0x1a   :  { %p462_p4 = pnand %p461_p3, %p455_p0 }
  0x1c   :  { %403 = vmatpush3.bf16.msra.mxu1 %v440_v9  ;;  %417 = vmatpush3.bf16.msra.mxu0 %v445_v14 }
  0x1d   :  { %404 = vmatprep.subr.bf16.mxu1 %v478_v1  ;;  %418 = vmatprep.subr.bf16.mxu0 %v478_v1 }
  0x20   :  { %405 = vmatpush3.bf16.msra.mxu1 %v441_v10  ;;  %419 = vmatpush3.bf16.msra.mxu0 %v446_v15 }
  0x21   :  { %420 = vmatprep.subr.bf16.mxu0 %v478_v1 }
  0x24   :  { %421 = vmatpush3.bf16.msra.mxu0 %v447_v16 }
  0x25   :  { %422 = vmatprep.subr.bf16.mxu0 %v478_v1 }
  0x28   :  { %423 = vmatpush3.bf16.msra.mxu0 %v448_v25 }
  0x29   :  { %424 = vmatprep.subr.bf16.mxu0 %v478_v1 }
  0x2c   :  { %425 = vmatpush3.bf16.msra.mxu0 %v449_v26 }
  0xd8   :  { %v82_v18 = vpop.f32.mrb[0].mxu0 }
  0xd9   :  { %v83_v19 = vadd.f32 %v343_v17, %v82_v18  ;;  %v388_v20 = vpop.f32.mrb[1].mxu0 }
  0xda   :  { %v85_v21 = vpop.f32.mrb[2].mxu0 }
  0xdb   :  { %v88_v22 = vmax.f32 %v83_v19, 0.0  ;;  %v389_v23 = vpop.f32.mrb[3].mxu0 }
  0xdd   :  { %v89_v24 = vpack.c.bf16 %v88_v22, %v88_v22 }
  0xdf   :  { %407 = vmatmul.mubr.bf16.vlgmr.msra.gmra.mrb[0].mxu1 %v89_v24 }
 0x1b2   :  { %v195_v28 = vpop.f32.mrb[0].mxu1 }
 0x1b3   :  { %v196_v29 = vadd.f32 %v346_v27, %v195_v28  ;;  %v408_v30 = vpop.f32.mrb[1].mxu1 }
 0x1b4   :  { %v198_v31 = vpop.f32.mrb[2].mxu1 }
 0x1b5   :  { %v201_v32 = vmax.f32 %v196_v29, 0.0  ;;  %v409_v33 = vpop.f32.mrb[3].mxu1 }
 0x1b7   :  { %v202_v34 = vpack.c.bf16 %v201_v32, %v201_v32 }
 0x1b9   :  { %427 = vmatmul.mubr.bf16.vlgmr.msra.gmra.mrb[4].mxu0 %v202_v34 }
 0x28c   :  { %v308_v36 = vpop.f32.mrb[4].mxu0 }
 0x28d   :  { %v309_v37 = vadd.f32 %v355_v35, %v308_v36  ;;  %v428_v38 = vpop.f32.mrb[5].mxu0 }
 0x28e   :  { %v311_v39 = vpop.f32.mrb[6].mxu0 }
 0x28f   :  { %v429_v40 = vpop.f32.mrb[7].mxu0  ;;  %v314_v41 = vsel %vm44_vm1, %v309_v37, -inf }
 0x290   :  { %315 = vmax.xlane.f32.xlu0 %v314_v41 }
 0x31d   :  { %v316_v42 = vpop.xlane.xlu0 %315 }
 0x31e   :  { %v317_v43 = vsub.f32 %v309_v37, %v316_v42 }
 0x320   :  { %v318_v44 = vmul.f32 1.442695, %v317_v43 }
 0x322   :  { %450 = vpow2.f32 %v318_v44 }
 0x32c   :  { %v451_v45 = vpop.eup %450 }
 0x32d   :  { %v320_v46 = vsel %vm44_vm1, %v451_v45, 0.0 }
 0x32e   :  { %321 = vadd.xlane.f32.xlu0 %v320_v46 }
 0x3bb   :  { %v322_v47 = vpop.xlane.xlu0 %321 }
 0x3bc   :  { %452 = vrcp.f32 %v322_v47 }
 0x3c6   :  { %v453_v48 = vpop.eup %452 }
 0x3c7   :  { %v324_v49 = vmul.f32 %v453_v48, %v322_v47 }
 0x3c9   :  { %v325_v50 = vsub.f32 2.0, %v324_v49 }
 0x3cb   :  { %v326_v51 = vmul.f32 %v453_v48, %v325_v50 }
 0x3cd   :  { %v327_v52 = vmul.f32 %v451_v45, %v326_v51 }
 0x3cf   :  { %328 = vst.msk [vmem:[#allocation2] sm:$0xff] %vm44_vm1, %v327_v52 }
 0x3d0   :  { %465 = shalt.err (!%p462_p4)
}
 0x3d1   :  { %s466_s16 = scalar_lea.hbm %s627_s7, 128 }
 0x3d2   :  { %p467_p5 = scmp.ne.s32.totalorder %s627_s7, %s466_s16  ;;  %p470_p6 = scmp.lt.u32.totalorder %s466_s16, %s627_s7 }
 0x3d4   :  { %p472_p7 = pnand %p470_p6, %p467_p5 }
 0x3d6   :  { %475 = shalt.err (!%p472_p7)
}
 0x3d7   :  { %338 = dma.vmem_to_hbm [thread:$0]  %s336_s5, 128, %s627_s7, [#allocation3]  }
 0x3d8   :  { %476 = dma.done.wait [#allocation3], 128  }
 0x3d9   :  { %477 = vsyncadd [#allocation3], 4294967168 }
 0x3da   :  { %342 = vsyncpa [#allocation3], 1 }

</bundles_post_ra>
